<compile_context>
chip_gen: v7x
topology: tpu7x:2x2x1
jax: 0.10.0
libtpu: 0.0.40
codegen_flags: <defaults>
</compile_context>

<pallas_src>
import functools

import jax
import jax.numpy as jnp
from jax.experimental import pallas as pl
from jax.experimental.pallas import tpu as pltpu


# ----------------------------------------------------------------------------
# Kernel
# ----------------------------------------------------------------------------
def _actor_biattn_kernel(
    r_ref, og_ref,
    w_fi1, b_fi1, w_fi2, b_fi2,
    w_pi1, b_pi1, w_pi2, b_pi2,
    w_qm1, b_qm1, w_kv, b_kv,
    w_po1, b_po1,
    w_m1b, w_m2, b_m2, w_m3, b_m3,
    out_ref,
    *, num_obj, tb, max_action,
):
    f32 = jnp.float32
    kvw = w_kv.shape[1]          # 128 = [K | V@Wo]
    embed = kvw // 2             # 64

    def mm(x, w_ref):
        # bf16 (or f32) operands, f32 accumulation on the MXU.
        return jnp.dot(x.astype(w_ref.dtype), w_ref[...],
                       preferred_element_type=f32)

    def linear(x, w_ref, b_ref, relu=False):
        y = mm(x, w_ref) + b_ref[...]                    # bias add in f32
        return jnp.maximum(y, 0.0) if relu else y

    # ---- f_in MLP on the robot observation (TB rows) -------------------------
    h = linear(r_ref[...], w_fi1, b_fi1, relu=True)
    f_in = linear(h, w_fi2, b_fi2)                       # (TB, 64) f32

    # ---- lane-fused [scaled-q | mlp-layer1(f_in branch)] projection ----------
    x_qm1 = linear(f_in, w_qm1, b_qm1)                   # (TB, 128)
    lane = jax.lax.broadcasted_iota(jnp.int32, (1, kvw), 1)
    q_pad = jnp.where(lane < embed, x_qm1, 0.0)          # V half exactly zero

    # ---- object path: one slab of num_obj*TB rows (no per-object unroll) -----
    h = linear(og_ref[...], w_pi1, b_pi1, relu=True)     # (N*TB, 64)
    phi = linear(h, w_pi2, b_pi2)                        # (N*TB, 64)
    kv = linear(phi, w_kv, b_kv)                         # (N*TB, 128) = [K | V@Wo]
    kv3 = kv.reshape(num_obj, tb, kvw)                   # sublane-aligned split

    # ---- length-1-query attention: softmax over the object axis --------------
    # q_pad's V-half lanes are zero, so q_pad . kv_n == q . k_n.
    scores = jnp.sum(q_pad[None, :, :] * kv3, axis=-1, keepdims=True)  # (N,TB,1)
    m = jnp.max(scores, axis=0)                          # (TB, 1)
    es = jnp.exp(scores - m[None, :, :])                 # EUP, f32
    inv = pl.reciprocal(jnp.sum(es, axis=0), approx=True)             # (TB, 1)
    acc = jnp.sum(es * kv3, axis=0) * inv                # (TB, 128)

    # ---- phi_out layer 1: K-half of acc is zeroed by w_po1's padded rows;
    #      b_o is folded into b_po1 at prep time ------------------------------
    h_po1 = linear(acc, w_po1, b_po1, relu=True)         # (TB, 64)

    # ---- action head.  x_qm1's second half already holds f_in@W_m1a + b_m1';
    #      w_m1b adds the (phi_out2-composed) phi branch into those lanes.
    #      relu(q) garbage in lanes [0, embed) is killed by w_m2's zero rows. --
    h1 = jnp.maximum(x_qm1 + mm(h_po1, w_m1b), 0.0)      # (TB, 128)
    h2 = linear(h1, w_m2, b_m2, relu=True)               # (TB, 64)
    a = linear(h2, w_m3, b_m3)                           # (TB, 128) lane-dense
    out_ref[...] = (max_action * jnp.tanh(a)).astype(out_ref.dtype)


# ----------------------------------------------------------------------------
# Wrapper
# ----------------------------------------------------------------------------
def _round_up(v, m):
    return (v + m - 1) // m * m


def _preprocess(x, env):
    B, obs_size = x.shape
    robot = env['robot_obs_size']
    obj = env['obj_obs_size']
    goal = env['goal_size']
    assert (obs_size - robot) % (obj + goal) == 0
    num_obj = (obs_size - robot) // (obj + goal)
    assert num_obj >= 1
    obj_obs = x[:, robot:robot + obj * num_obj].reshape(B, num_obj, obj)
    goal_obs = x[:, robot + obj * num_obj:].reshape(B, num_obj, goal)
    og = jnp.concatenate([obj_obs, goal_obs], axis=-1)   # (B, N, obj+goal)
    r = x[:, :robot]                                     # (B, robot)
    return og, r, num_obj


def prepare_kernel_params(p, compute_dtype, out_lanes):
    """Fuse / fold / pad the logical (pre-transposed) params into kernel order.

    All compositions are done in f32 BEFORE the bf16 cast (exact algebra,
    single rounding).  Weights -> compute_dtype, biases -> f32.
    """
    f32 = jnp.float32
    wc = lambda a: a.astype(compute_dtype)
    bc = lambda a: a.astype(f32)
    embed = p['wq_w'].shape[0]                 # 64
    scale = 1.0 / float(embed) ** 0.5

    w_m1a = p['mlp1_w'][:embed]                # (64, 64): f_in branch of mlp1
    w_m1b = p['mlp1_w'][embed:]                # (16, 64): phi_out branch of mlp1
    # Fold phi_out layer 2 into the mlp1 phi branch.
    w_m1b_c = p['phi_out2_w'] @ w_m1b          # (64, 64)
    b_m1_c = p['mlp1_b'] + p['phi_out2_b'] @ w_m1b      # (1, 64)

    # Lane-fuse the two matmuls on f_in: [q (pre-scaled, with bias) | mlp1a].
    w_qm1 = jnp.concatenate([p['wq_w'] * scale, w_m1a], axis=1)     # (64, 128)
    b_qm1 = jnp.concatenate([p['wq_b'] * scale, b_m1_c], axis=1)    # (1, 128)

    # Fold the attention out-projection into V: kv = [K | V @ W_o].
    w_kv = jnp.concatenate([p['wk_w'], p['wv_w'] @ p['wo_w']], axis=1)   # (64, 128)
    b_kv = jnp.concatenate([p['wk_b'], p['wv_b'] @ p['wo_w']], axis=1)   # (1, 128)

    # phi_out layer 1 reads the fused [K|V] accumulator: pad its input to 128
    # rows with the K half zeroed; fold b_o into its bias.
    zeros64 = jnp.zeros((embed, embed), f32)
    w_po1p = jnp.concatenate([zeros64, p['phi_out1_w']], axis=0)         # (128, 64)
    b_po1p = p['phi_out1_b'] + p['wo_b'] @ p['phi_out1_w']               # (1, 64)

    # mlp1 phi branch padded to 128 output lanes (q half zero) so it adds onto
    # the fused [q | mlp1a] activation; mlp2 input padded to 128 rows (q half
    # zero) so the relu(q) garbage lanes contribute nothing.
    w_m1bp = jnp.concatenate([zeros64, w_m1b_c], axis=1)                 # (64, 128)
    w_m2p = jnp.concatenate([jnp.zeros_like(p['mlp2_w']), p['mlp2_w']], axis=0)  # (128, 64)

    # Lane-dense action head: pad the output projection to out_lanes.
    act = p['mlp3_w'].shape[1]
    w_m3p = jnp.concatenate(
        [p['mlp3_w'], jnp.zeros((p['mlp3_w'].shape[0], out_lanes - act), f32)], axis=1)
    b_m3p = jnp.concatenate([p['mlp3_b'], jnp.zeros((1, out_lanes - act), f32)], axis=1)

    return [
        wc(p['f_in1_w']), bc(p['f_in1_b']), wc(p['f_in2_w']), bc(p['f_in2_b']),
        wc(p['phi_in1_w']), bc(p['phi_in1_b']), wc(p['phi_in2_w']), bc(p['phi_in2_b']),
        wc(w_qm1), bc(b_qm1), wc(w_kv), bc(b_kv),
        wc(w_po1p), bc(b_po1p),
        wc(w_m1bp), wc(w_m2p), bc(p['mlp2_b']),
        wc(w_m3p), bc(b_m3p),
    ]


def actor_biattn_forward(x, params, env, *, tile_b=1024, compute_dtype=jnp.bfloat16):
    og, r, num_obj = _preprocess(x, env)
    B = x.shape[0]
    act_dim = int(env['action'])
    og_dim = og.shape[-1]
    robot_dim = r.shape[-1]
    assert act_dim <= 128

    # Batch tile: multiple of 16 (bf16 sublane packing).  Clamp so the grid has
    # at least 2 steps when the batch allows it -> both v7x TensorCores get
    # work under dimension_semantics=("parallel",).
    TB = min(int(tile_b), _round_up(max(1, (B + 1) // 2), 16))
    TB = max(16, _round_up(TB, 16))
    Bp = _round_up(B, TB)
    if Bp != B:
        pad = Bp - B
        r = jnp.pad(r, ((0, pad), (0, 0)))
        og = jnp.pad(og, ((0, pad), (0, 0), (0, 0)))
    n_tiles = Bp // TB

    # Per-tile object slab: rows [i*N*TB + n*TB + t] = (tile i, object n, row t)
    # so the kernel's (N*TB, og_dim) block needs no in-kernel gather.
    og_slab = (og.reshape(n_tiles, TB, num_obj, og_dim)
                 .transpose(0, 2, 1, 3)
                 .reshape(n_tiles * num_obj * TB, og_dim)
                 .astype(compute_dtype))
    r = r.astype(compute_dtype)

    out_lanes = max(128, _round_up(act_dim, 128))
    kp = prepare_kernel_params(params, compute_dtype, out_lanes)

    grid = (n_tiles,)
    in_specs = (
        [pl.BlockSpec((TB, robot_dim), lambda i: (i, 0)),
         pl.BlockSpec((num_obj * TB, og_dim), lambda i: (i, 0))]
        # Constant index_map -> small weights stay VMEM-resident across steps.
        + [pl.BlockSpec(p.shape, lambda i: (0, 0)) for p in kp]
    )

    out = pl.pallas_call(
        functools.partial(_actor_biattn_kernel, num_obj=num_obj, tb=TB,
                          max_action=float(env['action_max'])),
        out_shape=jax.ShapeDtypeStruct((Bp, out_lanes), jnp.float32),
        grid=grid,
        in_specs=in_specs,
        out_specs=pl.BlockSpec((TB, out_lanes), lambda i: (i, 0)),
        compiler_params=pltpu.CompilerParams(
            dimension_semantics=("parallel",),   # shard batch tiles across TCs (v7x)
            vmem_limit_bytes=32 * 1024 * 1024,   # safe on v5e/v6e/v7x
        ),
    )(r, og_slab, *kp)

    return jnp.squeeze(out[:B, :act_dim])        # mirror torch .squeeze()


# ----------------------------------------------------------------------------
# Synthetic params + pure-JAX reference
# ----------------------------------------------------------------------------
def make_params(key, env):
    """Deterministic synthetic parameters: weights (in, out), biases (1, out)."""
    robot = env['robot_obs_size']
    og_dim = env['obj_obs_size'] + env['goal_size']
    act = env['action']
    dims = [
        ('f_in1', robot, 64), ('f_in2', 64, 64),
        ('phi_in1', og_dim, 64), ('phi_in2', 64, 64),
        ('wq', 64, 64), ('wk', 64, 64), ('wv', 64, 64), ('wo', 64, 64),
        ('phi_out1', 64, 64), ('phi_out2', 64, 16),
        ('mlp1', 64 + 16, 64), ('mlp2', 64, 64), ('mlp3', 64, act),
    ]
    params = {}
    for name, fi, fo in dims:
        key, kw, kb = jax.random.split(key, 3)
        params[name + '_w'] = (jax.random.normal(kw, (fi, fo), jnp.float32)
                               * jnp.sqrt(2.0 / fi))
        params[name + '_b'] = 0.05 * jax.random.normal(kb, (1, fo), jnp.float32)
    return params


def reference_forward(x, params, env):
    """Pure-JAX f32 reference mirroring the PyTorch actor_biattn forward."""
    og, r, _ = _preprocess(x, env)
    lin = lambda t, w, b: t @ w + b
    relu = jax.nn.relu

    h = relu(lin(r, params['f_in1_w'], params['f_in1_b']))
    f_in = lin(h, params['f_in2_w'], params['f_in2_b'])                      # (B, 64)

    h = relu(jnp.einsum('bno,oh->bnh', og, params['phi_in1_w']) + params['phi_in1_b'])
    phi_in = jnp.einsum('bnh,hd->bnd', h, params['phi_in2_w']) + params['phi_in2_b']

    embed = params['wq_w'].shape[0]
    q = lin(f_in, params['wq_w'], params['wq_b']) / jnp.sqrt(float(embed))   # (B, 64)
    k = jnp.einsum('bnd,de->bne', phi_in, params['wk_w']) + params['wk_b']
    v = jnp.einsum('bnd,de->bne', phi_in, params['wv_w']) + params['wv_b']
    scores = jnp.einsum('bd,bnd->bn', q, k)
    aw = jax.nn.softmax(scores, axis=-1)
    attn = jnp.einsum('bn,bnd->bd', aw, v)
    attn = lin(attn, params['wo_w'], params['wo_b'])

    h = relu(lin(attn, params['phi_out1_w'], params['phi_out1_b']))
    phi_out = lin(h, params['phi_out2_w'], params['phi_out2_b'])             # (B, 16)

    feats = jnp.concatenate([f_in, phi_out], axis=-1)                        # (B, 80)
    h = relu(lin(feats, params['mlp1_w'], params['mlp1_b']))
    h = relu(lin(h, params['mlp2_w'], params['mlp2_b']))
    a = env['action_max'] * jnp.tanh(lin(h, params['mlp3_w'], params['mlp3_b']))
    return jnp.squeeze(a)


if __name__ == "__main__":
    env_params = {
        'action': 4,
        'action_max': 1.0,
        'goal_size': 4,
        'obj_obs_size': 12,
        'robot_obs_size': 8,
    }
    num_obj = 3
    batch = 2
    obs_size = (env_params['robot_obs_size']
                + num_obj * (env_params['obj_obs_size'] + env_params['goal_size']))  # 56

    key = jax.random.PRNGKey(0)
    k_x, k_p = jax.random.split(key)
    x = jax.random.normal(k_x, (batch, obs_size), jnp.float32)
    params = make_params(k_p, env_params)

    out_kernel = jax.block_until_ready(actor_biattn_forward(x, params, env_params))
    out_ref = jax.block_until_ready(reference_forward(x, params, env_params))

    assert out_kernel.shape == out_ref.shape == (batch, env_params['action'])
    # bf16 matmul operands (f32 accumulation) + approx reciprocal -> 2e-2 tol.
    assert jnp.allclose(out_kernel, out_ref, rtol=2e-2, atol=2e-2), (out_kernel, out_ref)
    print("KERNEL_OK")
</pallas_src>

<mosaic_0001>
module attributes {stable_mosaic.version = 11 : i64} {
  func.func @_actor_biattn_kernel(%arg0: i32, %arg1: memref<16x8xbf16, #tpu.memory_space<vmem>>, %arg2: memref<48x16xbf16, #tpu.memory_space<vmem>>, %arg3: memref<8x64xbf16, #tpu.memory_space<vmem>>, %arg4: memref<1x64xf32, #tpu.memory_space<vmem>>, %arg5: memref<64x64xbf16, #tpu.memory_space<vmem>>, %arg6: memref<1x64xf32, #tpu.memory_space<vmem>>, %arg7: memref<16x64xbf16, #tpu.memory_space<vmem>>, %arg8: memref<1x64xf32, #tpu.memory_space<vmem>>, %arg9: memref<64x64xbf16, #tpu.memory_space<vmem>>, %arg10: memref<1x64xf32, #tpu.memory_space<vmem>>, %arg11: memref<64x128xbf16, #tpu.memory_space<vmem>>, %arg12: memref<1x128xf32, #tpu.memory_space<vmem>>, %arg13: memref<64x128xbf16, #tpu.memory_space<vmem>>, %arg14: memref<1x128xf32, #tpu.memory_space<vmem>>, %arg15: memref<128x64xbf16, #tpu.memory_space<vmem>>, %arg16: memref<1x64xf32, #tpu.memory_space<vmem>>, %arg17: memref<64x128xbf16, #tpu.memory_space<vmem>>, %arg18: memref<128x64xbf16, #tpu.memory_space<vmem>>, %arg19: memref<1x64xf32, #tpu.memory_space<vmem>>, %arg20: memref<64x128xbf16, #tpu.memory_space<vmem>>, %arg21: memref<1x128xf32, #tpu.memory_space<vmem>>, %arg22: memref<16x128xf32, #tpu.memory_space<vmem>>) attributes {dimension_semantics = [#tpu.dimension_semantics<parallel>], iteration_bounds = array<i64: 1>, scalar_prefetch = 0 : i64, scratch_operands = 0 : i64, tpu.core_type = #tpu.core_type<tc>, window_params = [{transform_indices = @transform_0, window_bounds = array<i64: 16, 8>}, {transform_indices = @transform_1, window_bounds = array<i64: 48, 16>}, {pipeline_mode = #tpu.pipeline_mode<synchronous>, transform_indices = @transform_2, window_bounds = array<i64: 8, 64>}, {pipeline_mode = #tpu.pipeline_mode<synchronous>, transform_indices = @transform_3, window_bounds = array<i64: 1, 64>}, {pipeline_mode = #tpu.pipeline_mode<synchronous>, transform_indices = @transform_4, window_bounds = array<i64: 64, 64>}, {pipeline_mode = #tpu.pipeline_mode<synchronous>, transform_indices = @transform_5, window_bounds = array<i64: 1, 64>}, {pipeline_mode = #tpu.pipeline_mode<synchronous>, transform_indices = @transform_6, window_bounds = array<i64: 16, 64>}, {pipeline_mode = #tpu.pipeline_mode<synchronous>, transform_indices = @transform_7, window_bounds = array<i64: 1, 64>}, {pipeline_mode = #tpu.pipeline_mode<synchronous>, transform_indices = @transform_8, window_bounds = array<i64: 64, 64>}, {pipeline_mode = #tpu.pipeline_mode<synchronous>, transform_indices = @transform_9, window_bounds = array<i64: 1, 64>}, {pipeline_mode = #tpu.pipeline_mode<synchronous>, transform_indices = @transform_10, window_bounds = array<i64: 64, 128>}, {pipeline_mode = #tpu.pipeline_mode<synchronous>, transform_indices = @transform_11, window_bounds = array<i64: 1, 128>}, {pipeline_mode = #tpu.pipeline_mode<synchronous>, transform_indices = @transform_12, window_bounds = array<i64: 64, 128>}, {pipeline_mode = #tpu.pipeline_mode<synchronous>, transform_indices = @transform_13, window_bounds = array<i64: 1, 128>}, {pipeline_mode = #tpu.pipeline_mode<synchronous>, transform_indices = @transform_14, window_bounds = array<i64: 128, 64>}, {pipeline_mode = #tpu.pipeline_mode<synchronous>, transform_indices = @transform_15, window_bounds = array<i64: 1, 64>}, {pipeline_mode = #tpu.pipeline_mode<synchronous>, transform_indices = @transform_16, window_bounds = array<i64: 64, 128>}, {pipeline_mode = #tpu.pipeline_mode<synchronous>, transform_indices = @transform_17, window_bounds = array<i64: 128, 64>}, {pipeline_mode = #tpu.pipeline_mode<synchronous>, transform_indices = @transform_18, window_bounds = array<i64: 1, 64>}, {pipeline_mode = #tpu.pipeline_mode<synchronous>, transform_indices = @transform_19, window_bounds = array<i64: 64, 128>}, {pipeline_mode = #tpu.pipeline_mode<synchronous>, transform_indices = @transform_20, window_bounds = array<i64: 1, 128>}, {transform_indices = @transform_21, window_bounds = array<i64: 16, 128>}]} {
    %c0 = arith.constant 0 : index
    %c0_0 = arith.constant 0 : index
    %0 = vector.load %arg1[%c0, %c0_0] : memref<16x8xbf16, #tpu.memory_space<vmem>>, vector<16x8xbf16>
    %c0_1 = arith.constant 0 : index
    %c0_2 = arith.constant 0 : index
    %1 = vector.load %arg3[%c0_1, %c0_2] : memref<8x64xbf16, #tpu.memory_space<vmem>>, vector<8x64xbf16>
    %cst = arith.constant dense<0.000000e+00> : vector<16x64xf32>
    %2 = tpu.matmul %0, %1, %cst {dimension_numbers = #tpu.dot_dimension_numbers<[1], [0], [0], [1], [0, 0, 1, 1], [], []>} : vector<16x8xbf16>, vector<8x64xbf16>, vector<16x64xf32> -> vector<16x64xf32>
    %c0_3 = arith.constant 0 : index
    %c0_4 = arith.constant 0 : index
    %3 = vector.load %arg4[%c0_3, %c0_4] : memref<1x64xf32, #tpu.memory_space<vmem>>, vector<1x64xf32>
    %4 = vector.broadcast %3 : vector<1x64xf32> to vector<16x64xf32>
    %5 = arith.addf %2, %4 : vector<16x64xf32>
    %cst_5 = arith.constant 0.000000e+00 : f32
    %6 = vector.broadcast %cst_5 : f32 to vector<16x64xf32>
    %7 = arith.maximumf %5, %6 : vector<16x64xf32>
    %8 = arith.truncf %7 : vector<16x64xf32> to vector<16x64xbf16>
    %c0_6 = arith.constant 0 : index
    %c0_7 = arith.constant 0 : index
    %9 = vector.load %arg5[%c0_6, %c0_7] : memref<64x64xbf16, #tpu.memory_space<vmem>>, vector<64x64xbf16>
    %cst_8 = arith.constant dense<0.000000e+00> : vector<16x64xf32>
    %10 = tpu.matmul %8, %9, %cst_8 {dimension_numbers = #tpu.dot_dimension_numbers<[1], [0], [0], [1], [0, 0, 1, 1], [], []>} : vector<16x64xbf16>, vector<64x64xbf16>, vector<16x64xf32> -> vector<16x64xf32>
    %c0_9 = arith.constant 0 : index
    %c0_10 = arith.constant 0 : index
    %11 = vector.load %arg6[%c0_9, %c0_10] : memref<1x64xf32, #tpu.memory_space<vmem>>, vector<1x64xf32>
    %12 = vector.broadcast %11 : vector<1x64xf32> to vector<16x64xf32>
    %13 = arith.addf %10, %12 : vector<16x64xf32>
    %14 = arith.truncf %13 : vector<16x64xf32> to vector<16x64xbf16>
    %c0_11 = arith.constant 0 : index
    %c0_12 = arith.constant 0 : index
    %15 = vector.load %arg11[%c0_11, %c0_12] : memref<64x128xbf16, #tpu.memory_space<vmem>>, vector<64x128xbf16>
    %cst_13 = arith.constant dense<0.000000e+00> : vector<16x128xf32>
    %16 = tpu.matmul %14, %15, %cst_13 {dimension_numbers = #tpu.dot_dimension_numbers<[1], [0], [0], [1], [0, 0, 1, 1], [], []>} : vector<16x64xbf16>, vector<64x128xbf16>, vector<16x128xf32> -> vector<16x128xf32>
    %c0_14 = arith.constant 0 : index
    %c0_15 = arith.constant 0 : index
    %17 = vector.load %arg12[%c0_14, %c0_15] : memref<1x128xf32, #tpu.memory_space<vmem>>, vector<1x128xf32>
    %18 = vector.broadcast %17 : vector<1x128xf32> to vector<16x128xf32>
    %19 = arith.addf %16, %18 : vector<16x128xf32>
    %20 = tpu.iota {dimensions = array<i32: 1>} : vector<1x128xi32>
    %c64_i32 = arith.constant 64 : i32
    %21 = vector.broadcast %c64_i32 : i32 to vector<1x128xi32>
    %22 = arith.cmpi slt, %20, %21 : vector<1x128xi32>
    %cst_16 = arith.constant 0.000000e+00 : f32
    %23 = vector.shape_cast %22 : vector<1x128xi1> to vector<1x128xi1>
    %24 = vector.broadcast %23 : vector<1x128xi1> to vector<16x128xi1>
    %25 = vector.broadcast %cst_16 : f32 to vector<16x128xf32>
    %26 = arith.select %24, %19, %25 : vector<16x128xi1>, vector<16x128xf32>
    %c0_17 = arith.constant 0 : index
    %c0_18 = arith.constant 0 : index
    %27 = vector.load %arg2[%c0_17, %c0_18] : memref<48x16xbf16, #tpu.memory_space<vmem>>, vector<48x16xbf16>
    %c0_19 = arith.constant 0 : index
    %c0_20 = arith.constant 0 : index
    %28 = vector.load %arg7[%c0_19, %c0_20] : memref<16x64xbf16, #tpu.memory_space<vmem>>, vector<16x64xbf16>
    %cst_21 = arith.constant dense<0.000000e+00> : vector<48x64xf32>
    %29 = tpu.matmul %27, %28, %cst_21 {dimension_numbers = #tpu.dot_dimension_numbers<[1], [0], [0], [1], [0, 0, 1, 1], [], []>} : vector<48x16xbf16>, vector<16x64xbf16>, vector<48x64xf32> -> vector<48x64xf32>
    %c0_22 = arith.constant 0 : index
    %c0_23 = arith.constant 0 : index
    %30 = vector.load %arg8[%c0_22, %c0_23] : memref<1x64xf32, #tpu.memory_space<vmem>>, vector<1x64xf32>
    %31 = vector.broadcast %30 : vector<1x64xf32> to vector<48x64xf32>
    %32 = arith.addf %29, %31 : vector<48x64xf32>
    %cst_24 = arith.constant 0.000000e+00 : f32
    %33 = vector.broadcast %cst_24 : f32 to vector<48x64xf32>
    %34 = arith.maximumf %32, %33 : vector<48x64xf32>
    %35 = arith.truncf %34 : vector<48x64xf32> to vector<48x64xbf16>
    %c0_25 = arith.constant 0 : index
    %c0_26 = arith.constant 0 : index
    %36 = vector.load %arg9[%c0_25, %c0_26] : memref<64x64xbf16, #tpu.memory_space<vmem>>, vector<64x64xbf16>
    %cst_27 = arith.constant dense<0.000000e+00> : vector<48x64xf32>
    %37 = tpu.matmul %35, %36, %cst_27 {dimension_numbers = #tpu.dot_dimension_numbers<[1], [0], [0], [1], [0, 0, 1, 1], [], []>} : vector<48x64xbf16>, vector<64x64xbf16>, vector<48x64xf32> -> vector<48x64xf32>
    %c0_28 = arith.constant 0 : index
    %c0_29 = arith.constant 0 : index
    %38 = vector.load %arg10[%c0_28, %c0_29] : memref<1x64xf32, #tpu.memory_space<vmem>>, vector<1x64xf32>
    %39 = vector.broadcast %38 : vector<1x64xf32> to vector<48x64xf32>
    %40 = arith.addf %37, %39 : vector<48x64xf32>
    %41 = arith.truncf %40 : vector<48x64xf32> to vector<48x64xbf16>
    %c0_30 = arith.constant 0 : index
    %c0_31 = arith.constant 0 : index
    %42 = vector.load %arg13[%c0_30, %c0_31] : memref<64x128xbf16, #tpu.memory_space<vmem>>, vector<64x128xbf16>
    %cst_32 = arith.constant dense<0.000000e+00> : vector<48x128xf32>
    %43 = tpu.matmul %41, %42, %cst_32 {dimension_numbers = #tpu.dot_dimension_numbers<[1], [0], [0], [1], [0, 0, 1, 1], [], []>} : vector<48x64xbf16>, vector<64x128xbf16>, vector<48x128xf32> -> vector<48x128xf32>
    %c0_33 = arith.constant 0 : index
    %c0_34 = arith.constant 0 : index
    %44 = vector.load %arg14[%c0_33, %c0_34] : memref<1x128xf32, #tpu.memory_space<vmem>>, vector<1x128xf32>
    %45 = vector.broadcast %44 : vector<1x128xf32> to vector<48x128xf32>
    %46 = arith.addf %43, %45 : vector<48x128xf32>
    %47 = vector.shape_cast %46 : vector<48x128xf32> to vector<3x16x128xf32>
    %48 = vector.shape_cast %26 : vector<16x128xf32> to vector<1x16x128xf32>
    %49 = vector.broadcast %48 : vector<1x16x128xf32> to vector<3x16x128xf32>
    %50 = arith.mulf %49, %47 : vector<3x16x128xf32>
    %cst_35 = arith.constant dense<0.000000e+00> : vector<3x16xf32>
    %51 = vector.multi_reduction <add>, %50, %cst_35 [2] : vector<3x16x128xf32> to vector<3x16xf32>
    %52 = vector.shape_cast %51 : vector<3x16xf32> to vector<3x16x1xf32>
    %cst_36 = arith.constant dense<0xFF800000> : vector<16x1xf32>
    %53 = vector.multi_reduction <maximumf>, %52, %cst_36 [0] : vector<3x16x1xf32> to vector<16x1xf32>
    %54 = vector.shape_cast %53 : vector<16x1xf32> to vector<1x16x1xf32>
    %55 = vector.broadcast %54 : vector<1x16x1xf32> to vector<3x16x1xf32>
    %56 = arith.subf %52, %55 : vector<3x16x1xf32>
    %57 = math.exp %56 : vector<3x16x1xf32>
    %cst_37 = arith.constant dense<0.000000e+00> : vector<16x1xf32>
    %58 = vector.multi_reduction <add>, %57, %cst_37 [0] : vector<3x16x1xf32> to vector<16x1xf32>
    %59 = tpu.reciprocal %58 {approx = true} : vector<16x1xf32> -> vector<16x1xf32>
    %60 = vector.broadcast %57 : vector<3x16x1xf32> to vector<3x16x128xf32>
    %61 = arith.mulf %60, %47 : vector<3x16x128xf32>
    %cst_38 = arith.constant dense<0.000000e+00> : vector<16x128xf32>
    %62 = vector.multi_reduction <add>, %61, %cst_38 [0] : vector<3x16x128xf32> to vector<16x128xf32>
    %63 = vector.broadcast %59 : vector<16x1xf32> to vector<16x128xf32>
    %64 = arith.mulf %62, %63 : vector<16x128xf32>
    %65 = arith.truncf %64 : vector<16x128xf32> to vector<16x128xbf16>
    %c0_39 = arith.constant 0 : index
    %c0_40 = arith.constant 0 : index
    %66 = vector.load %arg15[%c0_39, %c0_40] : memref<128x64xbf16, #tpu.memory_space<vmem>>, vector<128x64xbf16>
    %cst_41 = arith.constant dense<0.000000e+00> : vector<16x64xf32>
    %67 = tpu.matmul %65, %66, %cst_41 {dimension_numbers = #tpu.dot_dimension_numbers<[1], [0], [0], [1], [0, 0, 1, 1], [], []>} : vector<16x128xbf16>, vector<128x64xbf16>, vector<16x64xf32> -> vector<16x64xf32>
    %c0_42 = arith.constant 0 : index
    %c0_43 = arith.constant 0 : index
    %68 = vector.load %arg16[%c0_42, %c0_43] : memref<1x64xf32, #tpu.memory_space<vmem>>, vector<1x64xf32>
    %69 = vector.broadcast %68 : vector<1x64xf32> to vector<16x64xf32>
    %70 = arith.addf %67, %69 : vector<16x64xf32>
    %cst_44 = arith.constant 0.000000e+00 : f32
    %71 = vector.broadcast %cst_44 : f32 to vector<16x64xf32>
    %72 = arith.maximumf %70, %71 : vector<16x64xf32>
    %73 = arith.truncf %72 : vector<16x64xf32> to vector<16x64xbf16>
    %c0_45 = arith.constant 0 : index
    %c0_46 = arith.constant 0 : index
    %74 = vector.load %arg17[%c0_45, %c0_46] : memref<64x128xbf16, #tpu.memory_space<vmem>>, vector<64x128xbf16>
    %cst_47 = arith.constant dense<0.000000e+00> : vector<16x128xf32>
    %75 = tpu.matmul %73, %74, %cst_47 {dimension_numbers = #tpu.dot_dimension_numbers<[1], [0], [0], [1], [0, 0, 1, 1], [], []>} : vector<16x64xbf16>, vector<64x128xbf16>, vector<16x128xf32> -> vector<16x128xf32>
    %76 = arith.addf %19, %75 : vector<16x128xf32>
    %cst_48 = arith.constant 0.000000e+00 : f32
    %77 = vector.broadcast %cst_48 : f32 to vector<16x128xf32>
    %78 = arith.maximumf %76, %77 : vector<16x128xf32>
    %79 = arith.truncf %78 : vector<16x128xf32> to vector<16x128xbf16>
    %c0_49 = arith.constant 0 : index
    %c0_50 = arith.constant 0 : index
    %80 = vector.load %arg18[%c0_49, %c0_50] : memref<128x64xbf16, #tpu.memory_space<vmem>>, vector<128x64xbf16>
    %cst_51 = arith.constant dense<0.000000e+00> : vector<16x64xf32>
    %81 = tpu.matmul %79, %80, %cst_51 {dimension_numbers = #tpu.dot_dimension_numbers<[1], [0], [0], [1], [0, 0, 1, 1], [], []>} : vector<16x128xbf16>, vector<128x64xbf16>, vector<16x64xf32> -> vector<16x64xf32>
    %c0_52 = arith.constant 0 : index
    %c0_53 = arith.constant 0 : index
    %82 = vector.load %arg19[%c0_52, %c0_53] : memref<1x64xf32, #tpu.memory_space<vmem>>, vector<1x64xf32>
    %83 = vector.broadcast %82 : vector<1x64xf32> to vector<16x64xf32>
    %84 = arith.addf %81, %83 : vector<16x64xf32>
    %cst_54 = arith.constant 0.000000e+00 : f32
    %85 = vector.broadcast %cst_54 : f32 to vector<16x64xf32>
    %86 = arith.maximumf %84, %85 : vector<16x64xf32>
    %87 = arith.truncf %86 : vector<16x64xf32> to vector<16x64xbf16>
    %c0_55 = arith.constant 0 : index
    %c0_56 = arith.constant 0 : index
    %88 = vector.load %arg20[%c0_55, %c0_56] : memref<64x128xbf16, #tpu.memory_space<vmem>>, vector<64x128xbf16>
    %cst_57 = arith.constant dense<0.000000e+00> : vector<16x128xf32>
    %89 = tpu.matmul %87, %88, %cst_57 {dimension_numbers = #tpu.dot_dimension_numbers<[1], [0], [0], [1], [0, 0, 1, 1], [], []>} : vector<16x64xbf16>, vector<64x128xbf16>, vector<16x128xf32> -> vector<16x128xf32>
    %c0_58 = arith.constant 0 : index
    %c0_59 = arith.constant 0 : index
    %90 = vector.load %arg21[%c0_58, %c0_59] : memref<1x128xf32, #tpu.memory_space<vmem>>, vector<1x128xf32>
    %91 = vector.broadcast %90 : vector<1x128xf32> to vector<16x128xf32>
    %92 = arith.addf %89, %91 : vector<16x128xf32>
    %93 = math.tanh %92 : vector<16x128xf32>
    %cst_60 = arith.constant 1.000000e+00 : f32
    %94 = vector.broadcast %cst_60 : f32 to vector<16x128xf32>
    %95 = arith.mulf %94, %93 : vector<16x128xf32>
    %c0_61 = arith.constant 0 : index
    %c0_62 = arith.constant 0 : index
    %96 = vector.load %arg22[%c0_61, %c0_62] : memref<16x128xf32, #tpu.memory_space<vmem>>, vector<16x128xf32>
    tpu.vector_store %arg22[%c0_61, %c0_62], %95 {strides = array<i32>} : memref<16x128xf32, #tpu.memory_space<vmem>>, vector<16x128xf32>,
    return
  }
  func.func @transform_0(%arg0: i32) -> (i32, i32) {
    %c0_i32 = arith.constant 0 : i32
    %c0_i32_0 = arith.constant 0 : i32
    return %arg0, %c0_i32 : i32, i32
  }
  func.func @transform_1(%arg0: i32) -> (i32, i32) {
    %c0_i32 = arith.constant 0 : i32
    %c0_i32_0 = arith.constant 0 : i32
    return %arg0, %c0_i32 : i32, i32
  }
  func.func @transform_2(%arg0: i32) -> (i32, i32) {
    %c0_i32 = arith.constant 0 : i32
    %c0_i32_0 = arith.constant 0 : i32
    %c0_i32_1 = arith.constant 0 : i32
    return %c0_i32, %c0_i32_0 : i32, i32
  }
  func.func @transform_3(%arg0: i32) -> (i32, i32) {
    %c0_i32 = arith.constant 0 : i32
    %c0_i32_0 = arith.constant 0 : i32
    %c0_i32_1 = arith.constant 0 : i32
    return %c0_i32, %c0_i32_0 : i32, i32
  }
  func.func @transform_4(%arg0: i32) -> (i32, i32) {
    %c0_i32 = arith.constant 0 : i32
    %c0_i32_0 = arith.constant 0 : i32
    %c0_i32_1 = arith.constant 0 : i32
    return %c0_i32, %c0_i32_0 : i32, i32
  }
  func.func @transform_5(%arg0: i32) -> (i32, i32) {
    %c0_i32 = arith.constant 0 : i32
    %c0_i32_0 = arith.constant 0 : i32
    %c0_i32_1 = arith.constant 0 : i32
    return %c0_i32, %c0_i32_0 : i32, i32
  }
  func.func @transform_6(%arg0: i32) -> (i32, i32) {
    %c0_i32 = arith.constant 0 : i32
    %c0_i32_0 = arith.constant 0 : i32
    %c0_i32_1 = arith.constant 0 : i32
    return %c0_i32, %c0_i32_0 : i32, i32
  }
  func.func @transform_7(%arg0: i32) -> (i32, i32) {
    %c0_i32 = arith.constant 0 : i32
    %c0_i32_0 = arith.constant 0 : i32
    %c0_i32_1 = arith.constant 0 : i32
    return %c0_i32, %c0_i32_0 : i32, i32
  }
  func.func @transform_8(%arg0: i32) -> (i32, i32) {
    %c0_i32 = arith.constant 0 : i32
    %c0_i32_0 = arith.constant 0 : i32
    %c0_i32_1 = arith.constant 0 : i32
    return %c0_i32, %c0_i32_0 : i32, i32
  }
  func.func @transform_9(%arg0: i32) -> (i32, i32) {
    %c0_i32 = arith.constant 0 : i32
    %c0_i32_0 = arith.constant 0 : i32
    %c0_i32_1 = arith.constant 0 : i32
    return %c0_i32, %c0_i32_0 : i32, i32
  }
  func.func @transform_10(%arg0: i32) -> (i32, i32) {
    %c0_i32 = arith.constant 0 : i32
    %c0_i32_0 = arith.constant 0 : i32
    %c0_i32_1 = arith.constant 0 : i32
    return %c0_i32, %c0_i32_0 : i32, i32
  }
  func.func @transform_11(%arg0: i32) -> (i32, i32) {
    %c0_i32 = arith.constant 0 : i32
    %c0_i32_0 = arith.constant 0 : i32
    %c0_i32_1 = arith.constant 0 : i32
    return %c0_i32, %c0_i32_0 : i32, i32
  }
  func.func @transform_12(%arg0: i32) -> (i32, i32) {
    %c0_i32 = arith.constant 0 : i32
    %c0_i32_0 = arith.constant 0 : i32
    %c0_i32_1 = arith.constant 0 : i32
    return %c0_i32, %c0_i32_0 : i32, i32
  }
  func.func @transform_13(%arg0: i32) -> (i32, i32) {
    %c0_i32 = arith.constant 0 : i32
    %c0_i32_0 = arith.constant 0 : i32
    %c0_i32_1 = arith.constant 0 : i32
    return %c0_i32, %c0_i32_0 : i32, i32
  }
  func.func @transform_14(%arg0: i32) -> (i32, i32) {
    %c0_i32 = arith.constant 0 : i32
    %c0_i32_0 = arith.constant 0 : i32
    %c0_i32_1 = arith.constant 0 : i32
    return %c0_i32, %c0_i32_0 : i32, i32
  }
  func.func @transform_15(%arg0: i32) -> (i32, i32) {
    %c0_i32 = arith.constant 0 : i32
    %c0_i32_0 = arith.constant 0 : i32
    %c0_i32_1 = arith.constant 0 : i32
    return %c0_i32, %c0_i32_0 : i32, i32
  }
  func.func @transform_16(%arg0: i32) -> (i32, i32) {
    %c0_i32 = arith.constant 0 : i32
    %c0_i32_0 = arith.constant 0 : i32
    %c0_i32_1 = arith.constant 0 : i32
    return %c0_i32, %c0_i32_0 : i32, i32
  }
  func.func @transform_17(%arg0: i32) -> (i32, i32) {
    %c0_i32 = arith.constant 0 : i32
    %c0_i32_0 = arith.constant 0 : i32
    %c0_i32_1 = arith.constant 0 : i32
    return %c0_i32, %c0_i32_0 : i32, i32
  }
  func.func @transform_18(%arg0: i32) -> (i32, i32) {
    %c0_i32 = arith.constant 0 : i32
    %c0_i32_0 = arith.constant 0 : i32
    %c0_i32_1 = arith.constant 0 : i32
    return %c0_i32, %c0_i32_0 : i32, i32
  }
  func.func @transform_19(%arg0: i32) -> (i32, i32) {
    %c0_i32 = arith.constant 0 : i32
    %c0_i32_0 = arith.constant 0 : i32
    %c0_i32_1 = arith.constant 0 : i32
    return %c0_i32, %c0_i32_0 : i32, i32
  }
  func.func @transform_20(%arg0: i32) -> (i32, i32) {
    %c0_i32 = arith.constant 0 : i32
    %c0_i32_0 = arith.constant 0 : i32
    %c0_i32_1 = arith.constant 0 : i32
    return %c0_i32, %c0_i32_0 : i32, i32
  }
  func.func @transform_21(%arg0: i32) -> (i32, i32) {
    %c0_i32 = arith.constant 0 : i32
    %c0_i32_0 = arith.constant 0 : i32
    return %arg0, %c0_i32 : i32, i32
  }
}

</mosaic_0001>

<bundles_post_ra>
// kernel: tpu_custom_call.1
= control target key start
LH: loop header
LB: loop body
LE: loop exit
PB: predicated region body
PF: predicated region fallthrough
CT: control target
= control target key end

     0   :  { %s1995_s0 = inlined_call_operand.vmem [shape: bf16[16,8], index: 0, kind: input, shape index: {}]   ;;  %s1996_s1 = inlined_call_operand.vmem [shape: bf16[48,16], index: 1, kind: input, shape index: {}]   ;;  %s1997_s2 = inlined_call_operand.hbm [shape: bf16[8,64], index: 2, kind: input, shape index: {}]   ;;  %s1998_s3 = inlined_call_operand.vmem [shape: f32[1,64], index: 3, kind: input, shape index: {}]   ;;  %s1999_s4 = inlined_call_operand.vmem [shape: bf16[64,64], index: 4, kind: input, shape index: {}]   ;;  %s2000_s5 = inlined_call_operand.vmem [shape: f32[1,64], index: 5, kind: input, shape index: {}]   ;;  %s2001_s6 = inlined_call_operand.hbm [shape: bf16[16,64], index: 6, kind: input, shape index: {}]   ;;  %s2002_s7 = inlined_call_operand.vmem [shape: f32[1,64], index: 7, kind: input, shape index: {}]   ;;  %s2003_s8 = inlined_call_operand.vmem [shape: bf16[64,64], index: 8, kind: input, shape index: {}]   ;;  %s2004_s9 = inlined_call_operand.vmem [shape: f32[1,64], index: 9, kind: input, shape index: {}]   ;;  %s2005_s10 = inlined_call_operand.vmem [shape: bf16[64,128], index: 10, kind: input, shape index: {}]   ;;  %s2006_s11 = inlined_call_operand.vmem [shape: f32[1,128], index: 11, kind: input, shape index: {}]   ;;  %s2007_s12 = inlined_call_operand.vmem [shape: bf16[64,128], index: 12, kind: input, shape index: {}]   ;;  %s2008_s13 = inlined_call_operand.vmem [shape: f32[1,128], index: 13, kind: input, shape index: {}]   ;;  %s2009_s14 = inlined_call_operand.vmem [shape: bf16[128,64], index: 14, kind: input, shape index: {}]   ;;  %s2010_s15 = inlined_call_operand.vmem [shape: f32[1,64], index: 15, kind: input, shape index: {}]   ;;  %s2011_s16 = inlined_call_operand.vmem [shape: bf16[64,128], index: 16, kind: input, shape index: {}]   ;;  %s2012_s17 = inlined_call_operand.vmem [shape: bf16[128,64], index: 17, kind: input, shape index: {}]   ;;  %s2013_s18 = inlined_call_operand.vmem [shape: f32[1,64], index: 18, kind: input, shape index: {}]   ;;  %s2014_s19 = inlined_call_operand.vmem [shape: bf16[64,128], index: 19, kind: input, shape index: {}]   ;;  %s2015_s20 = inlined_call_operand.vmem [shape: f32[1,128], index: 20, kind: input, shape index: {}]   ;;  %s2016_s21 = inlined_call_operand.hbm [shape: f32[16,128], index: 21, kind: output, shape index: {}]  }
   0x1   :  { %2020 = sst [smem:[#allocation11_spill]] %s1995_s0 }
   0x2   :  { %2021 = sst [smem:[#allocation12_spill]] %s1996_s1 }
   0x3   :  { %2022 = sst [smem:[#allocation13_spill]] %s1997_s2 }
   0x4   :  { %2023 = sst [smem:[#allocation14_spill]] %s1998_s3 }
   0x5   :  { %2024 = sst [smem:[#allocation15_spill]] %s1999_s4 }
   0x6   :  { %2025 = sst [smem:[#allocation16_spill]] %s2000_s5 }
   0x7   :  { %26 = vsyncpa [#allocation3], 0 }
   0x8   :  { %27 = vsyncpa [#allocation6], 0 }
   0x9   :  { %28 = vsyncpa [#allocation4], 0  ;;  %s1558_s2 = smov [#allocation2]   ;;  %s1559_s26 = smov [#allocation5]  }
   0xa   :  { %s39_s25 = sshll.u32 %s1558_s2, 4  ;;  %s54_s27 = sshll.u32 %s1559_s26, 4  ;;  %s40_s25 = int_to_ptr.vmem [resolvable:$true] %s39_s25  ;;  %s1677_s27 = int_to_ptr.vmem [resolvable:$true] %s54_s27 }
   0xb   :  { %s2026_s29 = sld [smem:[#allocation13_spill]] }
  0x11   :  { %s1486_s0 = scalar_lea.hbm %s2026_s29, 64 }
  0x12   :  { %p1487_p0 = scmp.ne.s32.totalorder %s2026_s29, %s1486_s0  ;;  %p1490_p1 = scmp.lt.u32.totalorder %s1486_s0, %s2026_s29 }
  0x14   :  { %p1492_p2 = pnand %p1490_p1, %p1487_p0 }
  0x16   :  { %1495 = shalt.err (!%p1492_p2)
}
  0x17   :  { %s1496_s23 = scalar_lea.vmem %s40_s25, 64  ;;  %p1501_p4 = scmp.lt.s32.totalorder %s40_s25, %s40_s25 }
  0x18   :  { %p1497_p3 = scmp.ne.s32.totalorder %s40_s25, %s1496_s23  ;;  %p1502_p5 = scmp.lt.s32.totalorder %s1496_s23, %s1496_s23 }
  0x1a   :  { %p1503_p6 = por %p1502_p5, %p1501_p4 }
  0x1c   :  { %p1504_p7 = pnand %p1503_p6, %p1497_p3 }
  0x1e   :  { %1507 = shalt.err (!%p1504_p7)
}
  0x1f   :  { %42 = dma.hbm_to_vmem [thread:$0]  %s2026_s29, 64, %s40_s25, [#allocation3]  }
  0x20   :  { %s1508_s3 = scalar_lea.hbm %s2001_s6, 128 }
  0x21   :  { %p1509_p8 = scmp.ne.s32.totalorder %s2001_s6, %s1508_s3  ;;  %p1512_p9 = scmp.lt.u32.totalorder %s1508_s3, %s2001_s6 }
  0x23   :  { %p1514_p10 = pnand %p1512_p9, %p1509_p8 }
  0x25   :  { %1517 = shalt.err (!%p1514_p10)
}
  0x26   :  { %s1518_s5 = scalar_lea.vmem %s1677_s27, 128  ;;  %p1523_p12 = scmp.lt.s32.totalorder %s1677_s27, %s1677_s27 }
  0x27   :  { %p1519_p11 = scmp.ne.s32.totalorder %s1677_s27, %s1518_s5  ;;  %p1524_p13 = scmp.lt.s32.totalorder %s1518_s5, %s1518_s5 }
  0x29   :  { %p1525_p0 = por %p1524_p13, %p1523_p12 }
  0x2b   :  { %p1526_p1 = pnand %p1525_p0, %p1519_p11 }
  0x2d   :  { %1529 = shalt.err (!%p1526_p1)
}
  0x2e   :  { %s1560_s25 = smov 64   ;;  %s1561_s29 = smov 4  }
  0x2f   :  { %60 = dma.hbm_to_vmem [thread:$0]  %s2001_s6, 128, %s1677_s27, [#allocation6], %s1560_s25, %s1560_s25, %s1561_s29  }
  0x30   :  { %1552 = dma.done.wait [#allocation3], 64  }
  0x31   :  { %1553 = vsyncadd [#allocation3], 4294967232 }
  0x32   :  { %1554 = dma.done.wait [#allocation6], 128  }
  0x33   :  { %1555 = vsyncadd [#allocation6], 4294967168  ;;  %v1562_v0 = vmov 0.0   ;;  %vm1563_vm0 = vmmov 0   ;;  %vm115_vm1 = vcmask 1043456   ;;  %s2027_s1 = sld [smem:[#allocation11_spill]] }
  0x34   :  { %1264 = vmatprep.subr.bf16.mxu1 %v1562_v0  ;;  %1266 = vmatprep.mubr.msk.bf16.mxu1 %vm1563_vm0, %v1562_v0  ;;  %v98_v1 = vld [vmem:[#allocation2] sm:$0xf]  ;;  %vm111_vm2 = vcmask 64512   ;;  %s2028_s26 = sld [smem:[#allocation15_spill]]  ;;  %v1431_v9 = vld [vmem:[%s2005_s10 + $0x8] sm:$0xff]   ;;  %v1432_v10 = vld [vmem:[%s2005_s10 + $0x10] sm:$0xff]  }
  0x35   :  { %1282 = vmatprep.subr.bf16.mxu0 %v1562_v0  ;;  %1290 = vmatprep.mubr.msk.bf16.mxu0 %vm1563_vm0, %v1562_v0  ;;  %v117_v2 = vsel %vm115_vm1, %v98_v1, 0  ;;  %v1430_v8 = vld [vmem:[%s2005_s10] sm:$0xff]   ;;  %s2029_s2 = sld [smem:[#allocation14_spill]]  ;;  %vm202_vm3 = vcmask 523264   ;;  %s2030_s28 = sld [smem:[#allocation12_spill]]  ;;  %vm374_vm4 = vcmask 130048  }
  0x36   :  { %1265 = vmatpush3.bf16.msra.mxu1 %v117_v2  ;;  %1283 = vmatpush3.bf16.msra.mxu0 %v1430_v8  ;;  %v1426_v20 = vld [vmem:[#allocation5] sm:$0xff]   ;;  %v1433_v25 = vld [vmem:[%s2005_s10 + $0x18] sm:$0xff]   ;;  %v1153_v36 = vld [vmem:[%s2002_s7] ss:$0 sm:$0xff] }
  0x37   :  { %1270 = vmatprep.subr.bf16.mxu1 %v1562_v0  ;;  %1284 = vmatprep.subr.bf16.mxu0 %v1562_v0  ;;  %v1438_v26 = vld [vmem:[%s2007_s12] sm:$0xff]   ;;  %v1435_v38 = vld [vmem:[%s2003_s8 + $0x8] sm:$0xff]   ;;  %v1436_v45 = vld [vmem:[%s2003_s8 + $0x10] sm:$0xff]  }
  0x38   :  { %v1434_v34 = vld [vmem:[%s2003_s8] sm:$0xff]   ;;  %v1437_v49 = vld [vmem:[%s2003_s8 + $0x18] sm:$0xff]  }
  0x39   :  { %v1421_v3 = vld [vmem:[%s2027_s1] sm:$0xff]   ;;  %s2031_s1 = sld [smem:[#allocation16_spill]] }
  0x3a   :  { %v1422_v4 = vld [vmem:[%s2028_s26] sm:$0xff]   ;;  %v1423_v5 = vld [vmem:[%s2028_s26 + $0x8] sm:$0xff]   ;;  %1267 = vmatmul.mubr.msk.bf16.vlgmr.msra.gmra.mrb[0].mxu1 %vm111_vm2, %v1421_v3  ;;  %v1424_v6 = vld [vmem:[%s2028_s26 + $0x10] sm:$0xff]   ;;  %1285 = vmatpush3.bf16.msra.mxu0 %v1431_v9 }
  0x3b   :  { %1271 = vmatpush3.bf16.msra.mxu1 %v1422_v4  ;;  %1278 = vmatprep.mubr.msk.bf16.mxu1 %vm1563_vm0, %v1562_v0  ;;  %v1425_v7 = vld [vmem:[%s2028_s26 + $0x18] sm:$0xff]   ;;  %v1138_v11 = vld [vmem:[%s2029_s2] ss:$0 sm:$0xff]  ;;  %v1428_v23 = vld [vmem:[%s2030_s28 + $0x8] sm:$0xff]  }
  0x3c   :  { %1272 = vmatprep.subr.bf16.mxu1 %v1562_v0  ;;  %1286 = vmatprep.subr.bf16.mxu0 %v1562_v0  ;;  %v1427_v22 = vld [vmem:[%s2030_s28] sm:$0xff]   ;;  %v1429_v24 = vld [vmem:[%s2030_s28 + $0x10] sm:$0xff]   ;;  %v1439_v4 = vld [vmem:[%s2007_s12 + $0x8] sm:$0xff]  }
  0x3e   :  { %1287 = vmatpush3.bf16.msra.mxu0 %v1432_v10 }
  0x3f   :  { %1273 = vmatpush3.bf16.msra.mxu1 %v1423_v5  ;;  %1288 = vmatprep.subr.bf16.mxu0 %v1562_v0  ;;  %v1141_v27 = vld [vmem:[%s2031_s1] ss:$0 sm:$0xff]  ;;  %v1440_v5 = vld [vmem:[%s2007_s12 + $0x10] sm:$0xff]  }
  0x40   :  { %1274 = vmatprep.subr.bf16.mxu1 %v1562_v0 }
  0x42   :  { %1289 = vmatpush3.bf16.msra.mxu0 %v1433_v25 }
  0x43   :  { %1275 = vmatpush3.bf16.msra.mxu1 %v1424_v6  ;;  %1308 = vmatprep.subr.bf16.mxu0 %v1562_v0  ;;  %v1441_v6 = vld [vmem:[%s2007_s12 + $0x18] sm:$0xff]  }
  0x44   :  { %1276 = vmatprep.subr.bf16.mxu1 %v1562_v0 }
  0x47   :  { %1277 = vmatpush3.bf16.msra.mxu1 %v1425_v7 }
  0x48   :  { %1294 = vmatprep.subr.bf16.mxu1 %v1562_v0 }
 0x10d   :  { %v153_v12 = vpop.f32.mrb[0].mxu1 }
 0x10e   :  { %v154_v13 = vadd.f32 %v1138_v11, %v153_v12  ;;  %v1268_v14 = vpop.f32.mrb[1].mxu1 }
 0x10f   :  { %v156_v15 = vpop.f32.mrb[2].mxu1 }
 0x110   :  { %v157_v16 = vadd.f32 %v1138_v11, %v156_v15  ;;  %v1269_v17 = vpop.f32.mrb[3].mxu1  ;;  %v160_v18 = vmax.f32 %v154_v13, 0.0  ;;  %v1161_v11 = vld [vmem:[%s2004_s9] ss:$0 sm:$0xff] }
 0x112   :  { %v161_v19 = vmax.f32 %v157_v16, 0.0 }
 0x114   :  { %v162_v21 = vpack.c.bf16 %v161_v19, %v160_v18 }
 0x116   :  { %1279 = vmatmul.mubr.msk.bf16.vlgmr.msra.gmra.mrb[4].mxu1 %vm202_vm3, %v162_v21 }
 0x117   :  { %1295 = vmatpush3.bf16.msra.mxu1 %v1426_v20  ;;  %1296 = vmatprep.mubr.msk.bf16.mxu1 %vm1563_vm0, %v1562_v0 }
 0x118   :  { %1328 = vmatprep.subr.bf16.mxu1 %v1562_v0 }
 0x11e   :  { %1297 = vmatmul.mubr.msk.bf16.vlgmr.msra.gmra.mrb[8].mxu1 %vm374_vm4, %v1427_v22 }
 0x11f   :  { %1300 = vmatprep.mubr.msk.bf16.mxu1 %vm1563_vm0, %v1562_v0  ;;  %1329 = vmatpush3.bf16.msra.mxu1 %v1438_v26 }
 0x120   :  { %1330 = vmatprep.subr.bf16.mxu1 %v1562_v0 }
 0x123   :  { %1331 = vmatpush3.bf16.msra.mxu1 %v1439_v4  ;;  %v1444_v4 = vld [vmem:[%s2009_s14 + $0x10] sm:$0xff]  }
 0x124   :  { %1332 = vmatprep.subr.bf16.mxu1 %v1562_v0 }
 0x126   :  { %1301 = vmatmul.mubr.msk.bf16.gmra.mrb[12].mxu1 %vm374_vm4, %v1428_v23 }
 0x127   :  { %1304 = vmatprep.mubr.msk.bf16.mxu1 %vm1563_vm0, %v1562_v0  ;;  %1333 = vmatpush3.bf16.msra.mxu1 %v1440_v5  ;;  %v1445_v5 = vld [vmem:[%s2009_s14 + $0x18] sm:$0xff]  }
 0x128   :  { %1334 = vmatprep.subr.bf16.mxu1 %v1562_v0 }
 0x12b   :  { %1335 = vmatpush3.bf16.msra.mxu1 %v1441_v6  ;;  %v1446_v6 = vld [vmem:[%s2009_s14 + $0x20] sm:$0xff]  }
 0x12c   :  { %1368 = vmatprep.subr.bf16.mxu1 %v1562_v0 }
 0x12e   :  { %1305 = vmatmul.mubr.msk.bf16.gmra.mrb[16].mxu1 %vm374_vm4, %v1429_v24 }
 0x12f   :  { %1336 = vmatprep.mubr.msk.bf16.mxu1 %vm1563_vm0, %v1562_v0 }
 0x1e9   :  { %v240_v28 = vpop.f32.mrb[4].mxu1 }
 0x1ea   :  { %v1280_v29 = vpop.f32.mrb[5].mxu1  ;;  %v241_v31 = vadd.f32 %v1141_v27, %v240_v28 }
 0x1eb   :  { %v243_v30 = vpop.f32.mrb[6].mxu1 }
 0x1ec   :  { %v244_v32 = vadd.f32 %v1141_v27, %v243_v30  ;;  %v1281_v33 = vpop.f32.mrb[7].mxu1 }
 0x1ed   :  { %v331_v33 = vlaneseq }
 0x1ee   :  { %v247_v35 = vpack.c.bf16 %v244_v32, %v241_v31 }
 0x1f0   :  { %1291 = vmatmul.mubr.msk.bf16.vlgmr.msra.gmra.mrb[0].mxu0 %vm202_vm3, %v247_v35  ;;  %v332_v35 = vand.u32 127, %v331_v33 }
 0x1f1   :  { %1309 = vmatpush3.bf16.msra.mxu0 %v1434_v34  ;;  %v418_v37 = vpop.f32.mrb[8].mxu1  ;;  %1316 = vmatprep.mubr.msk.bf16.mxu0 %vm1563_vm0, %v1562_v0  ;;  %v1147_v34 = vld [vmem:[%s2006_s11] ss:$0 sm:$0xff] }
 0x1f2   :  { %v419_v39 = vadd.f32 %v1153_v36, %v418_v37  ;;  %1310 = vmatprep.subr.bf16.mxu0 %v1562_v0  ;;  %v1298_v40 = vpop.f32.mrb[9].mxu1  ;;  %v1169_v37 = vld [vmem:[%s2008_s13] ss:$0 sm:$0xff]  ;;  %vm333_vm5 = vcmp.lt.s32.totalorder %v332_v35, 64 }
 0x1f3   :  { %v421_v41 = vpop.f32.mrb[10].mxu1 }
 0x1f4   :  { %v441_v42 = vmax.f32 %v419_v39, 0.0  ;;  %v422_v43 = vadd.f32 %v1153_v36, %v421_v41  ;;  %v1299_v44 = vpop.f32.mrb[11].mxu1 }
 0x1f5   :  { %1311 = vmatpush3.bf16.msra.mxu0 %v1435_v38 }
 0x1f6   :  { %v442_v46 = vmax.f32 %v422_v43, 0.0  ;;  %1312 = vmatprep.subr.bf16.mxu0 %v1562_v0 }
 0x1f8   :  { %v447_v47 = vpack.c.bf16 %v442_v46, %v441_v42 }
 0x1f9   :  { %1313 = vmatpush3.bf16.msra.mxu0 %v1436_v45  ;;  %v426_v48 = vpop.f32.mrb[12].mxu1 }
 0x1fa   :  { %v427_v50 = vadd.f32 %v1153_v36, %v426_v48  ;;  %1314 = vmatprep.subr.bf16.mxu0 %v1562_v0  ;;  %v1302_v51 = vpop.f32.mrb[13].mxu1 }
 0x1fb   :  { %v429_v52 = vpop.f32.mrb[14].mxu1 }
 0x1fc   :  { %v443_v53 = vmax.f32 %v427_v50, 0.0  ;;  %v430_v54 = vadd.f32 %v1153_v36, %v429_v52  ;;  %v1303_v55 = vpop.f32.mrb[15].mxu1 }
 0x1fd   :  { %1315 = vmatpush3.bf16.msra.mxu0 %v1437_v49 }
 0x1fe   :  { %v444_v56 = vmax.f32 %v430_v54, 0.0  ;;  %1348 = vmatprep.subr.bf16.mxu0 %v1562_v0 }
 0x200   :  { %v448_v57 = vpack.c.bf16 %v444_v56, %v443_v53  ;;  %1317 = vmatmul.mubr.msk.bf16.vlgmr.msra.gmra.mrb[4].mxu0 %vm202_vm3, %v447_v47 }
 0x201   :  { %v434_v58 = vpop.f32.mrb[16].mxu1  ;;  %1320 = vmatprep.mubr.msk.bf16.mxu0 %vm1563_vm0, %v1562_v0 }
 0x202   :  { %v435_v59 = vadd.f32 %v1153_v36, %v434_v58  ;;  %v1306_v60 = vpop.f32.mrb[17].mxu1 }
 0x203   :  { %v437_v61 = vpop.f32.mrb[18].mxu1 }
 0x204   :  { %v445_v62 = vmax.f32 %v435_v59, 0.0  ;;  %v438_v63 = vadd.f32 %v1153_v36, %v437_v61  ;;  %v1307_v1 = vpop.f32.mrb[19].mxu1 }
 0x206   :  { %v446_v2 = vmax.f32 %v438_v63, 0.0 }
 0x208   :  { %v449_v3 = vpack.c.bf16 %v446_v2, %v445_v62  ;;  %1321 = vmatmul.mubr.msk.bf16.gmra.mrb[8].mxu0 %vm202_vm3, %v448_v57  ;;  %v1442_v2 = vld [vmem:[%s2009_s14] sm:$0xff]  }
 0x209   :  { %1324 = vmatprep.mubr.msk.bf16.mxu0 %vm1563_vm0, %v1562_v0  ;;  %1349 = vmatpush3.bf16.msra.mxu0 %v1442_v2 }
 0x20a   :  { %1350 = vmatprep.subr.bf16.mxu0 %v1562_v0 }
 0x210   :  { %1325 = vmatmul.mubr.msk.bf16.gmra.mrb[12].mxu0 %vm202_vm3, %v449_v3  ;;  %v1443_v3 = vld [vmem:[%s2009_s14 + $0x8] sm:$0xff]  }
 0x211   :  { %1364 = vmatprep.mubr.msk.bf16.mxu0 %vm1563_vm0, %v1562_v0  ;;  %1351 = vmatpush3.bf16.msra.mxu0 %v1443_v3 }
 0x212   :  { %1352 = vmatprep.subr.bf16.mxu0 %v1562_v0 }
 0x215   :  { %1353 = vmatpush3.bf16.msra.mxu0 %v1444_v4 }
 0x216   :  { %1354 = vmatprep.subr.bf16.mxu0 %v1562_v0 }
 0x219   :  { %1355 = vmatpush3.bf16.msra.mxu0 %v1445_v5  ;;  %v1459_v5 = vld [vmem:[%s2012_s17 + $0x28] sm:$0xff]  }
 0x21a   :  { %1356 = vmatprep.subr.bf16.mxu0 %v1562_v0 }
 0x21d   :  { %1357 = vmatpush3.bf16.msra.mxu0 %v1446_v6  ;;  %v1177_v6 = vld [vmem:[%s2010_s15] ss:$0 sm:$0xff] }
 0x21e   :  { %1358 = vmatprep.subr.bf16.mxu0 %v1562_v0 }
 0x2c3   :  { %v324_v7 = vpop.f32.mrb[0].mxu0 }
 0x2c4   :  { %v1292_v8 = vpop.f32.mrb[1].mxu0  ;;  %v1839_v36 = vadd.f32 %v1147_v34, %v324_v7  ;;  %v1447_v7 = vld [vmem:[%s2009_s14 + $0x28] sm:$0xff]  }
 0x2c5   :  { %v327_v9 = vpop.f32.mrb[2].mxu0  ;;  %1359 = vmatpush3.bf16.msra.mxu0 %v1447_v7  ;;  %v1448_v8 = vld [vmem:[%s2009_s14 + $0x30] sm:$0xff]  }
 0x2c6   :  { %v1293_v10 = vpop.f32.mrb[3].mxu0  ;;  %v1846_v41 = vadd.f32 %v1147_v34, %v327_v9  ;;  %v336_v43 = vsel %vm333_vm5, %v1839_v36, 0.0  ;;  %1360 = vmatprep.subr.bf16.mxu0 %v1562_v0  ;;  %v1449_v9 = vld [vmem:[%s2009_s14 + $0x38] sm:$0xff]  }
 0x2c7   :  { %v1450_v10 = vld [vmem:[%s2011_s16] sm:$0xff]  }
 0x2c8   :  { %v337_v47 = vsel %vm333_vm5, %v1846_v41, 0.0 }
 0x2c9   :  { %1361 = vmatpush3.bf16.msra.mxu0 %v1448_v8 }
 0x2ca   :  { %1362 = vmatprep.subr.bf16.mxu0 %v1562_v0 }
 0x2cd   :  { %1363 = vmatpush3.bf16.msra.mxu0 %v1449_v9 }
 0x2ce   :  { %1380 = vmatprep.subr.bf16.mxu0 %v1562_v0 }
 0x2d3   :  { %v532_v12 = vpop.f32.mrb[4].mxu0 }
 0x2d4   :  { %v1318_v13 = vpop.f32.mrb[5].mxu0  ;;  %v533_v15 = vadd.f32 %v1161_v11, %v532_v12  ;;  %v1452_v12 = vld [vmem:[%s2011_s16 + $0x10] sm:$0xff]  }
 0x2d5   :  { %v535_v14 = vpop.f32.mrb[6].mxu0 }
 0x2d6   :  { %v536_v16 = vadd.f32 %v1161_v11, %v535_v14  ;;  %v1319_v17 = vpop.f32.mrb[7].mxu0 }
 0x2d8   :  { %v555_v18 = vpack.c.bf16 %v536_v16, %v533_v15 }
 0x2da   :  { %1337 = vmatmul.mubr.msk.bf16.vlgmr.msra.gmra.mrb[20].mxu1 %vm202_vm3, %v555_v18 }
 0x2db   :  { %v540_v19 = vpop.f32.mrb[8].mxu0  ;;  %1340 = vmatprep.mubr.msk.bf16.mxu1 %vm1563_vm0, %v1562_v0  ;;  %1369 = vmatpush3.bf16.msra.mxu1 %v1450_v10 }
 0x2dc   :  { %v1322_v20 = vpop.f32.mrb[9].mxu0  ;;  %v541_v22 = vadd.f32 %v1161_v11, %v540_v19  ;;  %1370 = vmatprep.subr.bf16.mxu1 %v1562_v0 }
 0x2dd   :  { %v543_v21 = vpop.f32.mrb[10].mxu0 }
 0x2de   :  { %v544_v23 = vadd.f32 %v1161_v11, %v543_v21  ;;  %v1323_v24 = vpop.f32.mrb[11].mxu0 }
 0x2e0   :  { %v556_v25 = vpack.c.bf16 %v544_v23, %v541_v22 }
 0x2e2   :  { %1341 = vmatmul.mubr.msk.bf16.gmra.mrb[24].mxu1 %vm202_vm3, %v556_v25 }
 0x2e3   :  { %v548_v26 = vpop.f32.mrb[12].mxu0  ;;  %1344 = vmatprep.mubr.msk.bf16.mxu1 %vm1563_vm0, %v1562_v0 }
 0x2e4   :  { %v1326_v27 = vpop.f32.mrb[13].mxu0  ;;  %v549_v29 = vadd.f32 %v1161_v11, %v548_v26 }
 0x2e5   :  { %v551_v28 = vpop.f32.mrb[14].mxu0 }
 0x2e6   :  { %v552_v30 = vadd.f32 %v1161_v11, %v551_v28  ;;  %v1327_v31 = vpop.f32.mrb[15].mxu0  ;;  %v1451_v11 = vld [vmem:[%s2011_s16 + $0x8] sm:$0xff]  }
 0x2e7   :  { %1371 = vmatpush3.bf16.msra.mxu1 %v1451_v11 }
 0x2e8   :  { %v557_v32 = vpack.c.bf16 %v552_v30, %v549_v29  ;;  %1372 = vmatprep.subr.bf16.mxu1 %v1562_v0 }
 0x2ea   :  { %1345 = vmatmul.mubr.msk.bf16.gmra.mrb[28].mxu1 %vm202_vm3, %v557_v32 }
 0x2eb   :  { %1376 = vmatprep.mubr.msk.bf16.mxu1 %vm1563_vm0, %v1562_v0  ;;  %1373 = vmatpush3.bf16.msra.mxu1 %v1452_v12 }
 0x2ec   :  { %1374 = vmatprep.subr.bf16.mxu1 %v1562_v0 }
 0x3ad   :  { %v640_v38 = vpop.f32.mrb[20].mxu1 }
 0x3ae   :  { %v1844_v39 = vadd.f32 %v1169_v37, %v640_v38  ;;  %v1338_v40 = vpop.f32.mrb[21].mxu1 }
 0x3af   :  { %v643_v42 = vpop.f32.mrb[22].mxu1 }
 0x3b0   :  { %v1849_v44 = vadd.f32 %v1169_v37, %v643_v42  ;;  %v1339_v45 = vpop.f32.mrb[23].mxu1  ;;  %v663_v46 = vmul.f32 %v1844_v39, %v336_v43 }
 0x3b2   :  { %669 = vadd.xlane.f32.xlu0 %v663_v46  ;;  %v664_v48 = vmul.f32 %v1849_v44, %v337_v47 }
 0x3b5   :  { %v648_v49 = vpop.f32.mrb[24].mxu1 }
 0x3b6   :  { %v1854_v50 = vadd.f32 %v1169_v37, %v648_v49  ;;  %671 = vadd.xlane.f32.xlu0 %v664_v48  ;;  %v1342_v51 = vpop.f32.mrb[25].mxu1 }
 0x3b7   :  { %v651_v52 = vpop.f32.mrb[26].mxu1 }
 0x3b8   :  { %v1343_v53 = vpop.f32.mrb[27].mxu1  ;;  %v665_v54 = vmul.f32 %v1854_v50, %v336_v43  ;;  %v1862_v62 = vadd.f32 %v1169_v37, %v651_v52 }
 0x3ba   :  { %673 = vadd.xlane.f32.xlu0 %v665_v54  ;;  %v666_v1 = vmul.f32 %v1862_v62, %v337_v47 }
 0x3bd   :  { %v656_v55 = vpop.f32.mrb[28].mxu1 }
 0x3be   :  { %v1857_v56 = vadd.f32 %v1169_v37, %v656_v55  ;;  %v1346_v57 = vpop.f32.mrb[29].mxu1 }
 0x3bf   :  { %v659_v58 = vpop.f32.mrb[30].mxu1 }
 0x3c0   :  { %v1859_v59 = vadd.f32 %v1169_v37, %v659_v58  ;;  %v1347_v60 = vpop.f32.mrb[31].mxu1  ;;  %v667_v61 = vmul.f32 %v1857_v56, %v336_v43 }
 0x3c2   :  { %677 = vadd.xlane.f32.xlu1 %v667_v61  ;;  %v668_v63 = vmul.f32 %v1859_v59, %v337_v47 }
 0x3c6   :  { %679 = vadd.xlane.f32.xlu1 %v668_v63 }
 0x3ca   :  { %675 = vadd.xlane.f32.xlu1 %v666_v1 }
 0x43f   :  { %v670_v13 = vpop.xlane.xlu0 %669 }
 0x443   :  { %v672_v14 = vpop.xlane.xlu0 %671 }
 0x447   :  { %v674_v17 = vpop.xlane.xlu0 %673 }
 0x44f   :  { %v678_v15 = vpop.xlane.xlu1 %677 }
 0x450   :  { %v681_v16 = vmax.f32 %v670_v13, %v678_v15 }
 0x452   :  { %v682_v18 = vmax.f32 %v681_v16, %v674_v17  ;;  %v1460_v16 = vld [vmem:[%s2012_s17 + $0x30] sm:$0xff]  }
 0x453   :  { %v680_v19 = vpop.xlane.xlu1 %679 }
 0x454   :  { %v685_v20 = vsub.f32 %v670_v13, %v682_v18  ;;  %v687_v21 = vsub.f32 %v674_v17, %v682_v18  ;;  %v689_v22 = vsub.f32 %v678_v15, %v682_v18  ;;  %v683_v25 = vmax.f32 %v672_v14, %v680_v19  ;;  %v1461_v17 = vld [vmem:[%s2012_s17 + $0x38] sm:$0xff]   ;;  %v1462_v18 = vld [vmem:[%s2014_s19] sm:$0xff]  }
 0x456   :  { %v691_v23 = vmul.f32 1.442695, %v685_v20  ;;  %v695_v24 = vmul.f32 1.442695, %v687_v21  ;;  %v699_v28 = vmul.f32 1.442695, %v689_v22 }
 0x457   :  { %v676_v26 = vpop.xlane.xlu1 %675 }
 0x458   :  { %1466 = vpow2.f32 %v691_v23  ;;  %v684_v27 = vmax.f32 %v683_v25, %v676_v26 }
 0x459   :  { %1468 = vpow2.f32 %v695_v24 }
 0x45a   :  { %v686_v29 = vsub.f32 %v672_v14, %v684_v27  ;;  %v688_v30 = vsub.f32 %v676_v26, %v684_v27  ;;  %v690_v31 = vsub.f32 %v680_v19, %v684_v27  ;;  %1470 = vpow2.f32 %v699_v28  ;;  %v1463_v19 = vld [vmem:[%s2014_s19 + $0x8] sm:$0xff]  }
 0x45c   :  { %v693_v32 = vmul.f32 1.442695, %v686_v29  ;;  %v697_v33 = vmul.f32 1.442695, %v688_v30  ;;  %v701_v34 = vmul.f32 1.442695, %v690_v31 }
 0x45d   :  { %v1464_v29 = vld [vmem:[%s2014_s19 + $0x10] sm:$0xff]  }
 0x45e   :  { %1472 = vpow2.f32 %v693_v32 }
 0x45f   :  { %1474 = vpow2.f32 %v697_v33 }
 0x460   :  { %1476 = vpow2.f32 %v701_v34 }
 0x462   :  { %v1467_v35 = vpop.eup %1466 }
 0x463   :  { %v1469_v37 = vpop.eup %1468  ;;  %v709_v49 = vmul.f32 %v1467_v35, %v1844_v39  ;;  %v1453_v39 = vld [vmem:[%s2011_s16 + $0x18] sm:$0xff]  }
 0x464   :  { %v703_v38 = vadd.f32 %v1469_v37, %v1467_v35  ;;  %v1471_v40 = vpop.eup %1470  ;;  %v711_v51 = vmul.f32 %v1469_v37, %v1854_v50  ;;  %1375 = vmatpush3.bf16.msra.mxu1 %v1453_v39  ;;  %v1455_v50 = vld [vmem:[%s2012_s17 + $0x8] sm:$0xff]  }
 0x465   :  { %v713_v57 = vmul.f32 %v1471_v40, %v1857_v56  ;;  %1400 = vmatprep.subr.bf16.mxu1 %v1562_v0  ;;  %v1456_v56 = vld [vmem:[%s2012_s17 + $0x10] sm:$0xff]  }
 0x466   :  { %v704_v43 = vadd.f32 %v1471_v40, %v703_v38  ;;  %v715_v54 = vadd.f32 %v711_v51, %v709_v49 }
 0x468   :  { %v1473_v42 = vpop.eup %1472  ;;  %1478 = vrcp.f32 %v704_v43  ;;  %v716_v61 = vadd.f32 %v715_v54, %v713_v57 }
 0x469   :  { %v1475_v45 = vpop.eup %1474  ;;  %v710_v52 = vmul.f32 %v1473_v42, %v1849_v44  ;;  %v1454_v44 = vld [vmem:[%s2012_s17] sm:$0xff]  }
 0x46a   :  { %v705_v46 = vadd.f32 %v1475_v45, %v1473_v42  ;;  %v1477_v47 = vpop.eup %1476  ;;  %v712_v53 = vmul.f32 %v1475_v45, %v1862_v62  ;;  %v1458_v62 = vld [vmem:[%s2012_s17 + $0x20] sm:$0xff]  }
 0x46b   :  { %v714_v58 = vmul.f32 %v1477_v47, %v1859_v59  ;;  %v1457_v59 = vld [vmem:[%s2012_s17 + $0x18] sm:$0xff]  }
 0x46c   :  { %v706_v48 = vadd.f32 %v1477_v47, %v705_v46  ;;  %v717_v55 = vadd.f32 %v712_v53, %v710_v52 }
 0x46e   :  { %1480 = vrcp.f32 %v706_v48  ;;  %v718_v63 = vadd.f32 %v717_v55, %v714_v58 }
 0x472   :  { %v1479_v60 = vpop.eup %1478 }
 0x473   :  { %v719_v2 = vmul.f32 %v1479_v60, %v716_v61 }
 0x478   :  { %v1481_v1 = vpop.eup %1480 }
 0x479   :  { %v720_v3 = vmul.f32 %v1481_v1, %v718_v63 }
 0x47b   :  { %v721_v4 = vpack.c.bf16 %v720_v3, %v719_v2 }
 0x47d   :  { %1365 = vmatmul.mubr.bf16.vlgmr.msra.gmra.mrb[16].mxu0 %v721_v4 }
 0x47e   :  { %1396 = vmatprep.mubr.msk.bf16.mxu0 %vm1563_vm0, %v1562_v0  ;;  %1381 = vmatpush3.bf16.msra.mxu0 %v1454_v44 }
 0x47f   :  { %1382 = vmatprep.subr.bf16.mxu0 %v1562_v0 }
 0x482   :  { %1383 = vmatpush3.bf16.msra.mxu0 %v1455_v50 }
 0x483   :  { %1384 = vmatprep.subr.bf16.mxu0 %v1562_v0 }
 0x486   :  { %1385 = vmatpush3.bf16.msra.mxu0 %v1456_v56 }
 0x487   :  { %1386 = vmatprep.subr.bf16.mxu0 %v1562_v0 }
 0x48a   :  { %1387 = vmatpush3.bf16.msra.mxu0 %v1457_v59 }
 0x48b   :  { %1388 = vmatprep.subr.bf16.mxu0 %v1562_v0 }
 0x48e   :  { %1389 = vmatpush3.bf16.msra.mxu0 %v1458_v62 }
 0x48f   :  { %1390 = vmatprep.subr.bf16.mxu0 %v1562_v0 }
 0x492   :  { %1391 = vmatpush3.bf16.msra.mxu0 %v1459_v5 }
 0x493   :  { %1392 = vmatprep.subr.bf16.mxu0 %v1562_v0 }
 0x496   :  { %1393 = vmatpush3.bf16.msra.mxu0 %v1460_v16 }
 0x497   :  { %1394 = vmatprep.subr.bf16.mxu0 %v1562_v0 }
 0x49a   :  { %1395 = vmatpush3.bf16.msra.mxu0 %v1461_v17 }
 0x550   :  { %v827_v7 = vpop.f32.mrb[16].mxu0 }
 0x551   :  { %v828_v8 = vadd.f32 %v1177_v6, %v827_v7  ;;  %v1366_v9 = vpop.f32.mrb[17].mxu0 }
 0x552   :  { %v830_v10 = vpop.f32.mrb[18].mxu0 }
 0x553   :  { %v831_v11 = vadd.f32 %v1177_v6, %v830_v10  ;;  %v1367_v12 = vpop.f32.mrb[19].mxu0  ;;  %v834_v13 = vmax.f32 %v828_v8, 0.0 }
 0x555   :  { %v835_v14 = vmax.f32 %v831_v11, 0.0 }
 0x557   :  { %v836_v15 = vpack.c.bf16 %v835_v14, %v834_v13 }
 0x559   :  { %1377 = vmatmul.mubr.msk.bf16.vlgmr.msra.gmra.mrb[32].mxu1 %vm202_vm3, %v836_v15 }
 0x55a   :  { %1408 = vmatprep.mubr.msk.bf16.mxu1 %vm1563_vm0, %v1562_v0  ;;  %1401 = vmatpush3.bf16.msra.mxu1 %v1462_v18 }
 0x55b   :  { %1402 = vmatprep.subr.bf16.mxu1 %v1562_v0 }
 0x55e   :  { %1403 = vmatpush3.bf16.msra.mxu1 %v1463_v19 }
 0x55f   :  { %1404 = vmatprep.subr.bf16.mxu1 %v1562_v0 }
 0x562   :  { %1405 = vmatpush3.bf16.msra.mxu1 %v1464_v29 }
 0x563   :  { %1406 = vmatprep.subr.bf16.mxu1 %v1562_v0  ;;  %v1200_v0 = vld [vmem:[%s2015_s20] ss:$0 sm:$0xff] }
 0x62c   :  { %v906_v20 = vpop.f32.mrb[32].mxu1 }
 0x62d   :  { %v913_v21 = vadd.f32 %v906_v20, %v1839_v36  ;;  %v1378_v22 = vpop.f32.mrb[33].mxu1  ;;  %v1465_v36 = vld [vmem:[%s2014_s19 + $0x18] sm:$0xff]  }
 0x62e   :  { %v909_v23 = vpop.f32.mrb[34].mxu1  ;;  %1407 = vmatpush3.bf16.msra.mxu1 %v1465_v36 }
 0x62f   :  { %v914_v24 = vadd.f32 %v909_v23, %v1846_v41  ;;  %v1379_v25 = vpop.f32.mrb[35].mxu1  ;;  %v915_v26 = vmax.f32 %v913_v21, 0.0  ;;  %v1191_v41 = vld [vmem:[%s2013_s18] ss:$0 sm:$0xff]  ;;  %s1564_s18 = smov [#allocation7]  }
 0x630   :  { %s1125_s19 = sshll.u32 %s1564_s18, 4  ;;  %s1126_s19 = int_to_ptr.vmem [resolvable:$true] %s1125_s19 }
 0x631   :  { %v916_v27 = vmax.f32 %v914_v24, 0.0  ;;  %s1530_s2 = scalar_lea.vmem %s1126_s19, 256  ;;  %p1535_p3 = scmp.lt.s32.totalorder %s1126_s19, %s1126_s19 }
 0x632   :  { %p1531_p2 = scmp.ne.s32.totalorder %s1126_s19, %s1530_s2  ;;  %p1536_p4 = scmp.lt.s32.totalorder %s1530_s2, %s1530_s2 }
 0x633   :  { %v917_v28 = vpack.c.bf16 %v916_v27, %v915_v26 }
 0x634   :  { %p1537_p5 = por %p1536_p4, %p1535_p3 }
 0x635   :  { %1397 = vmatmul.mubr.bf16.vlgmr.msra.gmra.mrb[20].mxu0 %v917_v28 }
 0x636   :  { %p1538_p6 = pnand %p1537_p5, %p1531_p2 }
 0x708   :  { %v1023_v30 = vpop.f32.mrb[20].mxu0 }
 0x709   :  { %v1024_v31 = vadd.f32 %v1191_v41, %v1023_v30  ;;  %v1398_v32 = vpop.f32.mrb[21].mxu0 }
 0x70a   :  { %v1026_v33 = vpop.f32.mrb[22].mxu0 }
 0x70b   :  { %v1027_v34 = vadd.f32 %v1191_v41, %v1026_v33  ;;  %v1399_v35 = vpop.f32.mrb[23].mxu0  ;;  %v1030_v37 = vmax.f32 %v1024_v31, 0.0 }
 0x70d   :  { %v1031_v38 = vmax.f32 %v1027_v34, 0.0 }
 0x70f   :  { %v1032_v40 = vpack.c.bf16 %v1031_v38, %v1030_v37 }
 0x711   :  { %1409 = vmatmul.mubr.msk.bf16.vlgmr.msra.gmra.mrb[36].mxu1 %vm202_vm3, %v1032_v40 }
 0x7e4   :  { %v1109_v42 = vpop.f32.mrb[36].mxu1 }
 0x7e5   :  { %v1110_v43 = vadd.f32 %v1200_v0, %v1109_v42  ;;  %v1410_v45 = vpop.f32.mrb[37].mxu1 }
 0x7e6   :  { %v1112_v46 = vpop.f32.mrb[38].mxu1 }
 0x7e7   :  { %1482 = vtanh.f32 %v1110_v43  ;;  %v1113_v47 = vadd.f32 %v1200_v0, %v1112_v46  ;;  %v1411_v48 = vpop.f32.mrb[39].mxu1 }
 0x7e9   :  { %1484 = vtanh.f32 %v1113_v47 }
 0x7f1   :  { %v1483_v49 = vpop.eup %1482 }
 0x7f2   :  { %1118 = vst [vmem:[#allocation7] sm:$0xff] %v1483_v49 }
 0x7f3   :  { %v1485_v51 = vpop.eup %1484 }
 0x7f4   :  { %1119 = vst [vmem:[#allocation7 + $0x8] sm:$0xff] %v1485_v51 }
 0x7f5   :  { %1541 = shalt.err (!%p1538_p6)
}
 0x7f6   :  { %s1542_s3 = scalar_lea.hbm %s2016_s21, 256 }
 0x7f7   :  { %p1543_p7 = scmp.ne.s32.totalorder %s2016_s21, %s1542_s3  ;;  %p1546_p8 = scmp.lt.u32.totalorder %s1542_s3, %s2016_s21 }
 0x7f9   :  { %p1548_p9 = pnand %p1546_p8, %p1543_p7 }
 0x7fb   :  { %1551 = shalt.err (!%p1548_p9)
}
 0x7fc   :  { %s1565_s0 = smov 128   ;;  %s1566_s30 = smov 8  }
 0x7fd   :  { %1131 = dma.vmem_to_hbm [thread:$0]  %s1126_s19, 256, %s2016_s21, [#allocation4], %s1565_s0, %s1565_s0, %s1566_s30  }
 0x7fe   :  { %1556 = dma.done.wait [#allocation4], 256  }
 0x7ff   :  { %1557 = vsyncadd [#allocation4], 4294967040 }
 0x800   :  { %1135 = vsyncpa [#allocation3], 1 }
 0x801   :  { %1136 = vsyncpa [#allocation6], 1 }
 0x802   :  { %1137 = vsyncpa [#allocation4], 1 }

</bundles_post_ra>
